<compile_context>
chip_gen: v6e
topology: v6e:2x2x1
jax: 0.10.0
libtpu: 0.0.40
codegen_flags: <defaults>
</compile_context>

<pallas_src>
import functools

import jax
import jax.numpy as jnp
from jax import lax
from jax.experimental import pallas as pl
from jax.experimental.pallas import tpu as pltpu


# ---------------------------------------------------------------------------
# Parameter packing: one (rows, 128) f32 slab, each layer block 8-row aligned.
#   rows [0, nh)        cols [0, ld)   -> W1 (out,in)   col ld  -> b1
#   rows [r2, r2+nh)    cols [0, nh)   -> W2 (out,in)   col nh  -> b2
#   rows [r3, r3+ld)    cols [0, nh)   -> W3 (out,in)   col nh  -> b3
# ---------------------------------------------------------------------------
def _round_up8(n):
    return ((n + 7) // 8) * 8


def _packed_rows(latent_dim, nhidden):
    r2 = _round_up8(nhidden)
    r3 = r2 + _round_up8(nhidden)
    total = r3 + _round_up8(latent_dim)
    return r2, r3, total


def pack_params(params, latent_dim=4, nhidden=20):
    """params = (w1, b1, w2, b2, w3, b3) in PyTorch nn.Linear layout (out,in)."""
    w1, b1, w2, b2, w3, b3 = [jnp.asarray(p, jnp.float32) for p in params]
    r2, r3, rows = _packed_rows(latent_dim, nhidden)
    p = jnp.zeros((rows, 128), jnp.float32)
    p = p.at[0:nhidden, 0:latent_dim].set(w1)
    p = p.at[0:nhidden, latent_dim].set(b1)
    p = p.at[r2:r2 + nhidden, 0:nhidden].set(w2)
    p = p.at[r2:r2 + nhidden, nhidden].set(b2)
    p = p.at[r3:r3 + latent_dim, 0:nhidden].set(w3)
    p = p.at[r3:r3 + latent_dim, nhidden].set(b3)
    return p


# ---------------------------------------------------------------------------
# Kernel bodies
# ---------------------------------------------------------------------------
def _elu(v):
    # ELU(alpha=1). Clamp before exp so the inactive branch never hits inf.
    return jnp.where(v > 0, v, jnp.exp(jnp.minimum(v, 0.0)) - 1.0)


def _load_packed(p_ref, nh, ld):
    r2, r3, _ = _packed_rows(ld, nh)
    w1 = p_ref[0:nh, 0:ld]                 # (nh, ld)
    b1 = p_ref[0:nh, ld:ld + 1]            # (nh, 1)
    w2 = p_ref[r2:r2 + nh, 0:nh]           # (nh, nh)
    b2 = p_ref[r2:r2 + nh, nh:nh + 1]      # (nh, 1)
    w3 = p_ref[r3:r3 + ld, 0:nh]           # (ld, nh)
    b3 = p_ref[r3:r3 + ld, nh:nh + 1]      # (ld, 1)
    return w1, b1, w2, b2, w3, b3


def _mlp(x_t, w1, b1, w2, b2, w3, b3, ld):
    """f(x): x_t is (latent_dim, B) with batch on the lane axis."""
    # Layer 1: contraction depth = latent_dim (4) -> unrolled VPU FMAs.
    h = b1 + w1[:, 0:1] * x_t[0:1, :]
    for k in range(1, ld):
        h = h + w1[:, k:k + 1] * x_t[k:k + 1, :]
    h = _elu(h)                                                         # (nh, B)
    h = _elu(jnp.dot(w2, h, preferred_element_type=jnp.float32) + b2)   # (nh, B)
    return jnp.dot(w3, h, preferred_element_type=jnp.float32) + b3      # (ld, B)


def _odefunc_kernel(p_ref, x_ref, o_ref, *, nh, ld):
    w = _load_packed(p_ref, nh, ld)
    out = _mlp(x_ref[...].astype(jnp.float32), *w, ld=ld)
    o_ref[...] = out.astype(o_ref.dtype)


def _euler_kernel(p_ref, x_ref, o_ref, *, nh, ld, nsteps, dt):
    # Weights loaded from VMEM once; all RHS evaluations stay inside one call.
    w = _load_packed(p_ref, nh, ld)

    def step(_, x):
        return x + dt * _mlp(x, *w, ld=ld)

    x = lax.fori_loop(0, nsteps, step, x_ref[...].astype(jnp.float32),
                      unroll=True)
    o_ref[...] = x.astype(o_ref.dtype)


# ---------------------------------------------------------------------------
# Wrappers
# ---------------------------------------------------------------------------
def _run_batched(kernel, packed, x, latent_dim, nhidden, *, flops_scale=1,
                 block_b=None):
    B = x.shape[0]
    if block_b is None:
        block_b = 128 if B <= 128 else 512
    n_blocks = (B + block_b - 1) // block_b
    Bp = n_blocks * block_b

    # Batch on the lane axis; pad to a full lane-tile multiple (done in JAX,
    # outside the kernel).
    x_t = jnp.zeros((latent_dim, Bp), jnp.float32).at[:, :B].set(
        jnp.asarray(x, jnp.float32).T)

    rows = packed.shape[0]
    flops = 2 * B * (latent_dim * nhidden + nhidden * nhidden
                     + nhidden * latent_dim) * flops_scale
    out_t = pl.pallas_call(
        kernel,
        out_shape=jax.ShapeDtypeStruct((latent_dim, Bp), jnp.float32),
        grid_spec=pltpu.PrefetchScalarGridSpec(
            num_scalar_prefetch=0,
            grid=(n_blocks,),
            in_specs=[
                pl.BlockSpec((rows, 128), lambda i: (0, 0)),          # params
                pl.BlockSpec((latent_dim, block_b), lambda i: (0, i)),  # x^T
            ],
            out_specs=pl.BlockSpec((latent_dim, block_b), lambda i: (0, i)),
        ),
        compiler_params=pltpu.CompilerParams(
            dimension_semantics=("parallel",)),
        cost_estimate=pl.CostEstimate(
            flops=int(flops),
            transcendentals=int(2 * B * nhidden * flops_scale),
            bytes_accessed=int(4 * (packed.size + 2 * latent_dim * Bp))),
    )(packed, x_t)
    return out_t[:, :B].T.astype(x.dtype)


def latent_odefunc_forward(t, x, packed_params, *, latent_dim=4, nhidden=20,
                           block_b=None):
    """Single RHS evaluation f(t, x); matches the PyTorch module forward."""
    del t  # unused, as in the PyTorch module
    kernel = functools.partial(_odefunc_kernel, nh=nhidden, ld=latent_dim)
    return _run_batched(kernel, packed_params, x, latent_dim, nhidden,
                        block_b=block_b)


def latent_ode_euler(x0, packed_params, *, nsteps, dt, latent_dim=4,
                     nhidden=20, block_b=None):
    """nsteps fixed-step Euler updates fused into ONE pallas_call
    (weights stay resident in VMEM across all RHS evaluations)."""
    kernel = functools.partial(_euler_kernel, nh=nhidden, ld=latent_dim,
                               nsteps=nsteps, dt=float(dt))
    return _run_batched(kernel, packed_params, x0, latent_dim, nhidden,
                        flops_scale=nsteps, block_b=block_b)


# ---------------------------------------------------------------------------
# Init + pure-JAX reference
# ---------------------------------------------------------------------------
def init_params(key, latent_dim=4, nhidden=20, dtype=jnp.float32):
    """PyTorch nn.Linear-style uniform init; weights stored (out_f, in_f)."""
    ks = jax.random.split(key, 6)

    def linear(kw, kb, fan_in, fan_out):
        bound = 1.0 / (fan_in ** 0.5)
        w = jax.random.uniform(kw, (fan_out, fan_in), dtype, -bound, bound)
        b = jax.random.uniform(kb, (fan_out,), dtype, -bound, bound)
        return w, b

    w1, b1 = linear(ks[0], ks[1], latent_dim, nhidden)
    w2, b2 = linear(ks[2], ks[3], nhidden, nhidden)
    w3, b3 = linear(ks[4], ks[5], nhidden, latent_dim)
    return (w1, b1, w2, b2, w3, b3)


def _reference_rhs(x, params):
    w1, b1, w2, b2, w3, b3 = params

    def elu(v):
        return jnp.where(v > 0, v, jnp.exp(jnp.minimum(v, 0.0)) - 1.0)

    h = elu(x @ w1.T + b1)
    h = elu(h @ w2.T + b2)
    return h @ w3.T + b3


# TODO(synk): the PyTorch module's `self.nfe` call counter is Python-side
# bookkeeping with no kernel equivalent.

if __name__ == "__main__":
    latent_dim, nhidden, batch = 4, 20, 8

    key = jax.random.PRNGKey(0)
    kp, kx = jax.random.split(key)
    params = init_params(kp, latent_dim=latent_dim, nhidden=nhidden)
    packed = pack_params(params, latent_dim=latent_dim, nhidden=nhidden)
    x = jax.random.normal(kx, (batch, latent_dim), dtype=jnp.float32)
    t = jnp.float32(0.0)  # unused, mirrors the PyTorch forward signature

    # --- single RHS evaluation (module forward) ---
    out = latent_odefunc_forward(t, x, packed, latent_dim=latent_dim,
                                 nhidden=nhidden)
    out = jax.block_until_ready(out)
    ref = _reference_rhs(x, params)
    assert out.shape == (batch, latent_dim)
    assert jnp.allclose(out, ref, atol=1e-5, rtol=1e-5)

    # --- fused multi-evaluation (Euler solve) inside one pallas_call ---
    nsteps, dt = 16, 0.05
    xT = latent_ode_euler(x, packed, nsteps=nsteps, dt=dt,
                          latent_dim=latent_dim, nhidden=nhidden)
    xT = jax.block_until_ready(xT)
    x_ref = x
    for _ in range(nsteps):
        x_ref = x_ref + dt * _reference_rhs(x_ref, params)
    assert xT.shape == (batch, latent_dim)
    assert jnp.allclose(xT, x_ref, atol=1e-4, rtol=1e-4)

    print("KERNEL_OK")
</pallas_src>

<mosaic_0001>
module attributes {stable_mosaic.version = 11 : i64} {
  func.func @_odefunc_kernel(%arg0: i32, %arg1: memref<56x128xf32, #tpu.memory_space<vmem>>, %arg2: memref<4x128xf32, #tpu.memory_space<vmem>>, %arg3: memref<4x128xf32, #tpu.memory_space<vmem>>) attributes {dimension_semantics = [#tpu.dimension_semantics<parallel>], iteration_bounds = array<i64: 1>, scalar_prefetch = 0 : i64, scratch_operands = 0 : i64, tpu.core_type = #tpu.core_type<tc>, window_params = [{pipeline_mode = #tpu.pipeline_mode<synchronous>, transform_indices = @transform_0, window_bounds = array<i64: 56, 128>}, {transform_indices = @transform_1, window_bounds = array<i64: 4, 128>}, {transform_indices = @transform_2, window_bounds = array<i64: 4, 128>}]} {
    %c0 = arith.constant 0 : index
    %c0_0 = arith.constant 0 : index
    %0 = vector.load %arg1[%c0, %c0_0] : memref<56x128xf32, #tpu.memory_space<vmem>>, vector<20x4xf32>
    %c0_1 = arith.constant 0 : index
    %c4 = arith.constant 4 : index
    %1 = vector.load %arg1[%c0_1, %c4] : memref<56x128xf32, #tpu.memory_space<vmem>>, vector<20x1xf32>
    %c24 = arith.constant 24 : index
    %c0_2 = arith.constant 0 : index
    %2 = vector.load %arg1[%c24, %c0_2] : memref<56x128xf32, #tpu.memory_space<vmem>>, vector<20x20xf32>
    %c24_3 = arith.constant 24 : index
    %c20 = arith.constant 20 : index
    %3 = vector.load %arg1[%c24_3, %c20] : memref<56x128xf32, #tpu.memory_space<vmem>>, vector<20x1xf32>
    %c48 = arith.constant 48 : index
    %c0_4 = arith.constant 0 : index
    %4 = vector.load %arg1[%c48, %c0_4] : memref<56x128xf32, #tpu.memory_space<vmem>>, vector<4x20xf32>
    %c48_5 = arith.constant 48 : index
    %c20_6 = arith.constant 20 : index
    %5 = vector.load %arg1[%c48_5, %c20_6] : memref<56x128xf32, #tpu.memory_space<vmem>>, vector<4x1xf32>
    %c0_7 = arith.constant 0 : index
    %c0_8 = arith.constant 0 : index
    %6 = vector.load %arg2[%c0_7, %c0_8] : memref<4x128xf32, #tpu.memory_space<vmem>>, vector<4x128xf32>
    %7 = vector.extract_strided_slice %0 {offsets = [0, 0], sizes = [20, 1], strides = [1, 1]} : vector<20x4xf32> to vector<20x1xf32>
    %8 = vector.extract_strided_slice %6 {offsets = [0, 0], sizes = [1, 128], strides = [1, 1]} : vector<4x128xf32> to vector<1x128xf32>
    %9 = vector.broadcast %7 : vector<20x1xf32> to vector<20x128xf32>
    %10 = vector.broadcast %8 : vector<1x128xf32> to vector<20x128xf32>
    %11 = arith.mulf %9, %10 : vector<20x128xf32>
    %12 = vector.broadcast %1 : vector<20x1xf32> to vector<20x128xf32>
    %13 = arith.addf %12, %11 : vector<20x128xf32>
    %14 = vector.extract_strided_slice %0 {offsets = [0, 1], sizes = [20, 1], strides = [1, 1]} : vector<20x4xf32> to vector<20x1xf32>
    %15 = vector.extract_strided_slice %6 {offsets = [1, 0], sizes = [1, 128], strides = [1, 1]} : vector<4x128xf32> to vector<1x128xf32>
    %16 = vector.broadcast %14 : vector<20x1xf32> to vector<20x128xf32>
    %17 = vector.broadcast %15 : vector<1x128xf32> to vector<20x128xf32>
    %18 = arith.mulf %16, %17 : vector<20x128xf32>
    %19 = arith.addf %13, %18 : vector<20x128xf32>
    %20 = vector.extract_strided_slice %0 {offsets = [0, 2], sizes = [20, 1], strides = [1, 1]} : vector<20x4xf32> to vector<20x1xf32>
    %21 = vector.extract_strided_slice %6 {offsets = [2, 0], sizes = [1, 128], strides = [1, 1]} : vector<4x128xf32> to vector<1x128xf32>
    %22 = vector.broadcast %20 : vector<20x1xf32> to vector<20x128xf32>
    %23 = vector.broadcast %21 : vector<1x128xf32> to vector<20x128xf32>
    %24 = arith.mulf %22, %23 : vector<20x128xf32>
    %25 = arith.addf %19, %24 : vector<20x128xf32>
    %26 = vector.extract_strided_slice %0 {offsets = [0, 3], sizes = [20, 1], strides = [1, 1]} : vector<20x4xf32> to vector<20x1xf32>
    %27 = vector.extract_strided_slice %6 {offsets = [3, 0], sizes = [1, 128], strides = [1, 1]} : vector<4x128xf32> to vector<1x128xf32>
    %28 = vector.broadcast %26 : vector<20x1xf32> to vector<20x128xf32>
    %29 = vector.broadcast %27 : vector<1x128xf32> to vector<20x128xf32>
    %30 = arith.mulf %28, %29 : vector<20x128xf32>
    %31 = arith.addf %25, %30 : vector<20x128xf32>
    %cst = arith.constant 0.000000e+00 : f32
    %32 = vector.broadcast %cst : f32 to vector<20x128xf32>
    %33 = arith.cmpf ogt, %31, %32 : vector<20x128xf32>
    %cst_9 = arith.constant 0.000000e+00 : f32
    %34 = vector.broadcast %cst_9 : f32 to vector<20x128xf32>
    %35 = arith.minimumf %31, %34 : vector<20x128xf32>
    %36 = math.exp %35 : vector<20x128xf32>
    %cst_10 = arith.constant 1.000000e+00 : f32
    %37 = vector.broadcast %cst_10 : f32 to vector<20x128xf32>
    %38 = arith.subf %36, %37 : vector<20x128xf32>
    %39 = arith.select %33, %31, %38 : vector<20x128xi1>, vector<20x128xf32>
    %cst_11 = arith.constant dense<0.000000e+00> : vector<20x128xf32>
    %40 = tpu.matmul %2, %39, %cst_11 {dimension_numbers = #tpu.dot_dimension_numbers<[1], [0], [0], [1], [0, 0, 1, 1], [], []>} : vector<20x20xf32>, vector<20x128xf32>, vector<20x128xf32> -> vector<20x128xf32>
    %41 = vector.broadcast %3 : vector<20x1xf32> to vector<20x128xf32>
    %42 = arith.addf %40, %41 : vector<20x128xf32>
    %cst_12 = arith.constant 0.000000e+00 : f32
    %43 = vector.broadcast %cst_12 : f32 to vector<20x128xf32>
    %44 = arith.cmpf ogt, %42, %43 : vector<20x128xf32>
    %cst_13 = arith.constant 0.000000e+00 : f32
    %45 = vector.broadcast %cst_13 : f32 to vector<20x128xf32>
    %46 = arith.minimumf %42, %45 : vector<20x128xf32>
    %47 = math.exp %46 : vector<20x128xf32>
    %cst_14 = arith.constant 1.000000e+00 : f32
    %48 = vector.broadcast %cst_14 : f32 to vector<20x128xf32>
    %49 = arith.subf %47, %48 : vector<20x128xf32>
    %50 = arith.select %44, %42, %49 : vector<20x128xi1>, vector<20x128xf32>
    %cst_15 = arith.constant dense<0.000000e+00> : vector<4x128xf32>
    %51 = tpu.matmul %4, %50, %cst_15 {dimension_numbers = #tpu.dot_dimension_numbers<[1], [0], [0], [1], [0, 0, 1, 1], [], []>} : vector<4x20xf32>, vector<20x128xf32>, vector<4x128xf32> -> vector<4x128xf32>
    %52 = vector.broadcast %5 : vector<4x1xf32> to vector<4x128xf32>
    %53 = arith.addf %51, %52 : vector<4x128xf32>
    %c0_16 = arith.constant 0 : index
    %c0_17 = arith.constant 0 : index
    %54 = vector.load %arg3[%c0_16, %c0_17] : memref<4x128xf32, #tpu.memory_space<vmem>>, vector<4x128xf32>
    tpu.vector_store %arg3[%c0_16, %c0_17], %53 {strides = array<i32>} : memref<4x128xf32, #tpu.memory_space<vmem>>, vector<4x128xf32>,
    return
  }
  func.func @transform_0(%arg0: i32) -> (i32, i32) {
    %c0_i32 = arith.constant 0 : i32
    %c0_i32_0 = arith.constant 0 : i32
    %c0_i32_1 = arith.constant 0 : i32
    return %c0_i32, %c0_i32_0 : i32, i32
  }
  func.func @transform_1(%arg0: i32) -> (i32, i32) {
    %c0_i32 = arith.constant 0 : i32
    %c0_i32_0 = arith.constant 0 : i32
    return %c0_i32, %arg0 : i32, i32
  }
  func.func @transform_2(%arg0: i32) -> (i32, i32) {
    %c0_i32 = arith.constant 0 : i32
    %c0_i32_0 = arith.constant 0 : i32
    return %c0_i32, %arg0 : i32, i32
  }
}

</mosaic_0001>

<bundles_post_ra>
// kernel: tpu_custom_call.1
= control target key start
LH: loop header
LB: loop body
LE: loop exit
PB: predicated region body
PF: predicated region fallthrough
CT: control target
= control target key end

     0   :  { %7 = vsyncpa [#allocation3], 0  ;;  %s610_s0 = inlined_call_operand.hbm [shape: f32[56,128], index: 0, kind: input, shape index: {}]   ;;  %s611_s1 = inlined_call_operand.hbm [shape: f32[4,128], index: 1, kind: input, shape index: {}]   ;;  %s612_s2 = inlined_call_operand.hbm [shape: f32[4,128], index: 2, kind: output, shape index: {}]  }
   0x1   :  { %8 = vsyncpa [#allocation6], 0 }
   0x2   :  { %9 = vsyncpa [#allocation4], 0  ;;  %s537_s9 = smov [#allocation2]  }
   0x3   :  { %s15_s10 = sshll.u32 %s537_s9, 4  ;;  %s16_s10 = int_to_ptr.vmem [resolvable:$true] %s15_s10 }
   0x4   :  { %s479_s11 = scalar_lea.vmem %s16_s10, 896  ;;  %p484_p1 = scmp.lt.s32.totalorder %s16_s10, %s16_s10 }
   0x5   :  { %p480_p0 = scmp.ne.s32.totalorder %s16_s10, %s479_s11  ;;  %p485_p2 = scmp.lt.s32.totalorder %s479_s11, %s479_s11 }
   0x7   :  { %p486_p3 = por %p485_p2, %p484_p1 }
   0x9   :  { %p487_p4 = pnand %p486_p3, %p480_p0 }
   0xb   :  { %490 = shalt.err (!%p487_p4)
}
   0xc   :  { %s538_s12 = smov 128   ;;  %s539_s13 = smov 8  }
   0xd   :  { %21 = dma.hbm_to_vmem [thread:$0]  %s610_s0, 896, %s16_s10, [#allocation3], %s538_s12, %s538_s12, %s539_s13  }
   0xe   :  { %s540_s16 = smov [#allocation5]  }
   0xf   :  { %s28_s17 = sshll.u32 %s540_s16, 4  ;;  %s29_s17 = int_to_ptr.vmem [resolvable:$true] %s28_s17 }
  0x10   :  { %s499_s18 = scalar_lea.vmem %s29_s17, 64  ;;  %p504_p6 = scmp.lt.s32.totalorder %s29_s17, %s29_s17 }
  0x11   :  { %p500_p5 = scmp.ne.s32.totalorder %s29_s17, %s499_s18  ;;  %p505_p7 = scmp.lt.s32.totalorder %s499_s18, %s499_s18 }
  0x13   :  { %p506_p8 = por %p505_p7, %p504_p6 }
  0x15   :  { %p507_p9 = pnand %p506_p8, %p500_p5 }
  0x17   :  { %510 = shalt.err (!%p507_p9)
}
  0x18   :  { %31 = dma.hbm_to_vmem [thread:$0]  %s611_s1, 64, %s29_s17, [#allocation6]  }
  0x19   :  { %531 = dma.done.wait [#allocation3], 896  }
  0x1a   :  { %532 = vsyncadd [#allocation3], 4294966400 }
  0x1b   :  { %533 = dma.done.wait [#allocation6], 64  }
  0x1c   :  { %534 = vsyncadd [#allocation6], 4294967232  ;;  %v541_v0 = vmov 4   ;;  %v542_v1 = vmov 0   ;;  %v40_v2 = vld [vmem:[#allocation2 + $0x10] sm:$0xf]  ;;  %v61_v14 = vlaneseq }
  0x1d   :  { %448 = vset.pattern.permute.xlu1 %v541_v0  ;;  %447 = vset.pattern.permute.xlu0 %v542_v1  ;;  %v39_v3 = vld [vmem:[#allocation2 + $0x8] sm:$0xff]  ;;  %v543_v4 = vmov 1   ;;  %v38_v5 = vld [vmem:[#allocation2] sm:$0xff]  ;;  %v544_v6 = vmov 2   ;;  %v545_v7 = vmov 3   ;;  %v546_v8 = vmov 0.0  }
  0x1e   :  { %77 = vperm.xlu1 %448, %v40_v2   ;;  %58 = vperm.xlu0 %447, %v40_v2   ;;  %vm547_vm0 = vmmov 0   ;;  %v577_v9 = vld [vmem:[#allocation2 + $0x20] sm:$0xff]  ;;  %v579_v10 = vld [vmem:[#allocation2 + $0x28] sm:$0xf]  ;;  %v548_v11 = vmov 20   ;;  %v583_v12 = vld [vmem:[#allocation2 + $0x18] sm:$0xff] }
  0x1f   :  { %410 = vmatprep.subr.mxu0 %v546_v8  ;;  %425 = vmatprep.subr.mxu1 %v546_v8  ;;  %v586_v13 = vld [vmem:[#allocation2 + $0x30] sm:$0xf]  ;;  %v62_v17 = vshrl.u32 %v61_v14, 7  ;;  %v45_v21 = vld [vmem:[#allocation5] sm:$0xf]  ;;  %vm189_vm1 = vcmask 1043456  }
  0x20   :  { %416 = vmatprep.mubr.msk.f32.mxu0 %vm547_vm0, %v546_v8  ;;  %431 = vmatprep.mubr.msk.f32.mxu1 %vm547_vm0, %v546_v8  ;;  %vm182_vm5 = vcmask 162816   ;;  %s549_s0 = smov [#allocation7]  }
  0x21   :  { %v63_v20 = vsub.s32 0, %v62_v17  ;;  %v97_v23 = vsub.s32 1, %v62_v17  ;;  %v119_v26 = vsub.s32 2, %v62_v17  ;;  %v141_v32 = vsub.s32 3, %v62_v17  ;;  %s378_s1 = sshll.u32 %s549_s0, 4  ;;  %s379_s1 = int_to_ptr.vmem [resolvable:$true] %s378_s1 }
  0x22   :  { %449 = vset.pattern.permute.xlu1 %v543_v4  ;;  %53 = vperm.xlu0 %447, %v39_v3   ;;  %s511_s21 = scalar_lea.vmem %s379_s1, 64  ;;  %p516_p11 = scmp.lt.s32.totalorder %s379_s1, %s379_s1 }
  0x23   :  { %92 = vperm.xlu1 %449, %v40_v2   ;;  %v64_v25 = vrot.slane %v45_v21, %v63_v20  ;;  %v98_v27 = vrot.slane %v45_v21, %v97_v23  ;;  %v120_v30 = vrot.slane %v45_v21, %v119_v26  ;;  %v142_v37 = vrot.slane %v45_v21, %v141_v32  ;;  %p512_p10 = scmp.ne.s32.totalorder %s379_s1, %s511_s21  ;;  %p517_p12 = scmp.lt.s32.totalorder %s511_s21, %s511_s21 }
  0x25   :  { %p518_p13 = por %p517_p12, %p516_p11 }
  0x26   :  { %48 = vperm.xlu0 %447, %v38_v5  }
  0x27   :  { %450 = vset.pattern.permute.xlu1 %v541_v0  ;;  %p519_p0 = pnand %p518_p13, %p512_p10 }
  0x28   :  { %73 = vperm.xlu1 %450, %v39_v3  }
  0x2a   :  { %451 = vset.pattern.permute.xlu0 %v543_v4 }
  0x2b   :  { %88 = vperm.xlu0 %451, %v39_v3  }
  0x2c   :  { %452 = vset.pattern.permute.xlu1 %v544_v6 }
  0x2d   :  { %114 = vperm.xlu1 %452, %v40_v2  }
  0x2f   :  { %84 = vperm.xlu0 %451, %v38_v5  }
  0x31   :  { %453 = vset.pattern.permute.xlu1 %v541_v0 }
  0x32   :  { %69 = vperm.xlu1 %453, %v38_v5  }
  0x33   :  { %455 = vset.pattern.permute.xlu0 %v545_v7 }
  0x34   :  { %136 = vperm.xlu0 %455, %v40_v2  }
  0x36   :  { %454 = vset.pattern.permute.xlu1 %v544_v6 }
  0x37   :  { %110 = vperm.xlu1 %454, %v39_v3  }
  0x38   :  { %128 = vperm.xlu0 %455, %v38_v5  }
  0x3b   :  { %106 = vperm.xlu1 %454, %v38_v5  }
  0x3c   :  { %458 = vset.pattern.permute.xlu0 %v548_v11 }
  0x3d   :  { %174 = vperm.xlu0 %458, %v577_v9  }
  0x3f   :  { %456 = vset.pattern.permute.xlu1 %v545_v7 }
  0x40   :  { %132 = vperm.xlu1 %456, %v39_v3  }
  0x44   :  { %457 = vset.pattern.permute.xlu1 %v548_v11 }
  0x45   :  { %179 = vperm.xlu1 %457, %v579_v10  }
  0x49   :  { %169 = vperm.xlu1 %457, %v583_v12  }
  0x4d   :  { %293 = vperm.xlu1 %457, %v586_v13  }
  0x99   :  { %v78_v15 = vpop.permute.xlu1 %77  ;;  %v59_v16 = vpop.permute.xlu0 %58 }
  0x9a   :  { %v67_v29 = vmul.f32 %v64_v25, %v59_v16 }
  0x9c   :  { %v82_v35 = vadd.f32 %v78_v15, %v67_v29 }
  0x9d   :  { %v54_v18 = vpop.permute.xlu0 %53 }
  0x9e   :  { %v93_v19 = vpop.permute.xlu1 %92  ;;  %v66_v48 = vmul.f32 %v64_v25, %v54_v18 }
  0x9f   :  { %v101_v33 = vmul.f32 %v98_v27, %v93_v19 }
  0xa1   :  { %v49_v22 = vpop.permute.xlu0 %48  ;;  %v104_v39 = vadd.f32 %v101_v33, %v82_v35 }
  0xa2   :  { %v65_v43 = vmul.f32 %v64_v25, %v49_v22 }
  0xa3   :  { %v74_v24 = vpop.permute.xlu1 %73 }
  0xa4   :  { %v81_v57 = vadd.f32 %v74_v24, %v66_v48 }
  0xa6   :  { %v89_v28 = vpop.permute.xlu0 %88 }
  0xa7   :  { %v100_v51 = vmul.f32 %v98_v27, %v89_v28 }
  0xa8   :  { %v115_v31 = vpop.permute.xlu1 %114 }
  0xa9   :  { %v123_v36 = vmul.f32 %v120_v30, %v115_v31  ;;  %v103_v60 = vadd.f32 %v100_v51, %v81_v57 }
  0xaa   :  { %v85_v34 = vpop.permute.xlu0 %84 }
  0xab   :  { %v126_v41 = vadd.f32 %v123_v36, %v104_v39  ;;  %v99_v46 = vmul.f32 %v98_v27, %v85_v34 }
  0xad   :  { %v70_v38 = vpop.permute.xlu1 %69 }
  0xae   :  { %v80_v47 = vadd.f32 %v70_v38, %v65_v43 }
  0xaf   :  { %v137_v40 = vpop.permute.xlu0 %136 }
  0xb0   :  { %v145_v42 = vmul.f32 %v142_v37, %v137_v40  ;;  %v102_v54 = vadd.f32 %v99_v46, %v80_v47 }
  0xb2   :  { %v148_v44 = vadd.f32 %v145_v42, %v126_v41  ;;  %v111_v45 = vpop.permute.xlu1 %110 }
  0xb3   :  { %v129_v50 = vpop.permute.xlu0 %128  ;;  %v122_v58 = vmul.f32 %v120_v30, %v111_v45 }
  0xb4   :  { %v154_v49 = vmin.f32 %v148_v44, 0.0  ;;  %v143_v56 = vmul.f32 %v142_v37, %v129_v50  ;;  %vm151_vm2 = vcmp.gt.f32.partialorder %v148_v44, 0.0 }
  0xb5   :  { %v125_v63 = vadd.f32 %v122_v58, %v103_v60 }
  0xb6   :  { %v159_v52 = vmul.f32 1.442695, %v154_v49  ;;  %v107_v53 = vpop.permute.xlu1 %106 }
  0xb7   :  { %v121_v55 = vmul.f32 %v120_v30, %v107_v53 }
  0xb8   :  { %459 = vpow2.f32 %v159_v52  ;;  %v175_v25 = vpop.permute.xlu0 %174 }
  0xb9   :  { %v124_v59 = vadd.f32 %v121_v55, %v102_v54 }
  0xbb   :  { %v146_v61 = vadd.f32 %v143_v56, %v124_v59  ;;  %v133_v62 = vpop.permute.xlu1 %132 }
  0xbc   :  { %v144_v0 = vmul.f32 %v142_v37, %v133_v62 }
  0xbd   :  { %v152_v1 = vmin.f32 %v146_v61, 0.0  ;;  %vm149_vm4 = vcmp.gt.f32.partialorder %v146_v61, 0.0 }
  0xbe   :  { %v147_v2 = vadd.f32 %v144_v0, %v125_v63 }
  0xbf   :  { %v155_v3 = vmul.f32 1.442695, %v152_v1 }
  0xc0   :  { %v153_v4 = vmin.f32 %v147_v2, 0.0  ;;  %vm150_vm3 = vcmp.gt.f32.partialorder %v147_v2, 0.0  ;;  %v180_v20 = vpop.permute.xlu1 %179 }
  0xc1   :  { %461 = vpow2.f32 %v155_v3 }
  0xc2   :  { %v157_v5 = vmul.f32 1.442695, %v153_v4 }
  0xc4   :  { %463 = vpow2.f32 %v157_v5  ;;  %v170_v21 = vpop.permute.xlu1 %169 }
  0xc5   :  { %v460_v6 = vpop.eup %459 }
  0xc6   :  { %v390_v7 = vadd.f32 -1.0, %v460_v6 }
  0xc8   :  { %v166_v11 = vsel %vm151_vm2, %v148_v44, %v390_v7  ;;  %v294_v44 = vpop.permute.xlu1 %293 }
  0xc9   :  { %411 = vmatpush3.msk.msra.mxu0 %vm189_vm1, %v166_v11 }
  0xca   :  { %412 = vmatprep.subr.mxu0 %v546_v8 }
  0xce   :  { %v462_v14 = vpop.eup %461 }
  0xcf   :  { %v388_v17 = vadd.f32 -1.0, %v462_v14 }
  0xd1   :  { %v464_v15 = vpop.eup %463  ;;  %v164_v19 = vsel %vm149_vm4, %v146_v61, %v388_v17 }
  0xd2   :  { %v389_v16 = vadd.f32 -1.0, %v464_v15 }
  0xd4   :  { %v165_v18 = vsel %vm150_vm3, %v147_v2, %v389_v16 }
  0xd5   :  { %413 = vmatpush3.msra.mxu0 %v165_v18 }
  0xd6   :  { %414 = vmatprep.subr.mxu0 %v546_v8 }
  0xd7   :  { %415 = vmatpush3.msra.mxu0 %v164_v19 }
  0xd8   :  { %417 = vmatmul.mubr.msk.f32.vlgmr.msra.gmra.mxu0 %vm182_vm5, %v583_v12 }
  0xd9   :  { %419 = vmatprep.mubr.msk.f32.mxu0 %vm547_vm0, %v546_v8 }
  0xdc   :  { %420 = vmatmul.mubr.msk.f32.gmra.mxu0 %vm182_vm5, %v577_v9 }
  0xdd   :  { %422 = vmatprep.mubr.msk.f32.mxu0 %vm547_vm0, %v546_v8 }
  0xe0   :  { %423 = vmatmul.mubr.msk.f32.gmra.mxu0 %vm182_vm5, %v579_v10 }
 0x198   :  { %v259_v22 = vpop.f32.mrf.mxu0 }
 0x199   :  { %v260_v23 = vadd.f32 %v259_v22, %v170_v21 }
 0x19a   :  { %v418_v24 = vpop.f32.mrf.mxu0 }
 0x19b   :  { %v276_v27 = vmin.f32 %v260_v23, 0.0  ;;  %vm273_vm8 = vcmp.gt.f32.partialorder %v260_v23, 0.0 }
 0x19c   :  { %v264_v26 = vpop.f32.mrf.mxu0 }
 0x19d   :  { %v265_v12 = vadd.f32 %v264_v26, %v175_v25  ;;  %v279_v32 = vmul.f32 1.442695, %v276_v27 }
 0x19e   :  { %v421_v28 = vpop.f32.mrf.mxu0 }
 0x19f   :  { %v277_v29 = vmin.f32 %v265_v12, 0.0  ;;  %vm274_vm7 = vcmp.gt.f32.partialorder %v265_v12, 0.0 }
 0x1a0   :  { %v269_v30 = vpop.f32.mrf.mxu0 }
 0x1a1   :  { %v281_v31 = vmul.f32 1.442695, %v277_v29  ;;  %v270_v9 = vadd.f32 %v269_v30, %v180_v20 }
 0x1a2   :  { %v424_v33 = vpop.f32.mrf.mxu0 }
 0x1a3   :  { %v278_v34 = vmin.f32 %v270_v9, 0.0  ;;  %465 = vpow2.f32 %v281_v31  ;;  %vm275_vm6 = vcmp.gt.f32.partialorder %v270_v9, 0.0 }
 0x1a4   :  { %467 = vpow2.f32 %v279_v32 }
 0x1a5   :  { %v283_v35 = vmul.f32 1.442695, %v278_v34 }
 0x1a7   :  { %469 = vpow2.f32 %v283_v35 }
 0x1b0   :  { %v466_v10 = vpop.eup %465 }
 0x1b1   :  { %v468_v36 = vpop.eup %467  ;;  %v396_v39 = vadd.f32 -1.0, %v466_v10 }
 0x1b2   :  { %v395_v41 = vadd.f32 -1.0, %v468_v36 }
 0x1b3   :  { %v289_v42 = vsel %vm274_vm7, %v265_v12, %v396_v39 }
 0x1b4   :  { %v470_v37 = vpop.eup %469  ;;  %v288_v43 = vsel %vm273_vm8, %v260_v23, %v395_v41 }
 0x1b5   :  { %v397_v38 = vadd.f32 -1.0, %v470_v37 }
 0x1b7   :  { %v290_v40 = vsel %vm275_vm6, %v270_v9, %v397_v38 }
 0x1b8   :  { %426 = vmatpush3.msk.msra.mxu1 %vm189_vm1, %v290_v40 }
 0x1b9   :  { %427 = vmatprep.subr.mxu1 %v546_v8 }
 0x1ba   :  { %428 = vmatpush3.msra.mxu1 %v289_v42 }
 0x1bb   :  { %429 = vmatprep.subr.mxu1 %v546_v8 }
 0x1bc   :  { %430 = vmatpush3.msra.mxu1 %v288_v43 }
 0x1bd   :  { %432 = vmatmul.mubr.msk.f32.vlgmr.msra.gmra.mxu1 %vm182_vm5, %v586_v13 }
 0x27d   :  { %v367_v45 = vpop.f32.mrf.mxu1 }
 0x27e   :  { %v368_v46 = vadd.f32 %v367_v45, %v294_v44 }
 0x27f   :  { %v433_v47 = vpop.f32.mrf.mxu1 }
 0x280   :  { %371 = vst [vmem:[#allocation7] sm:$0xf] %v368_v46 }
 0x281   :  { %522 = shalt.err (!%p519_p0)
}
 0x282   :  { %381 = dma.vmem_to_hbm [thread:$0]  %s379_s1, 64, %s612_s2, [#allocation4]  }
 0x283   :  { %535 = dma.done.wait [#allocation4], 64  }
 0x284   :  { %536 = vsyncadd [#allocation4], 4294967232 }
 0x285   :  { %385 = vsyncpa [#allocation3], 1 }
 0x286   :  { %386 = vsyncpa [#allocation6], 1 }
 0x287   :  { %387 = vsyncpa [#allocation4], 1 }

</bundles_post_ra>
